<compile_context>
chip_gen: v7x
topology: tpu7x:2x2x1
jax: 0.10.0
libtpu: 0.0.40
codegen_flags: <defaults>
</compile_context>

<pallas_src>
import functools

import jax
import jax.numpy as jnp
from jax.experimental import pallas as pl
from jax.experimental.pallas import tpu as pltpu


def _tcn_bn_kernel(x_ref, w_ref, shift_ref, o_ref, *, K, V, NB, S):
    # x_ref:     (NB, S*Cin_p, L*V)     padded polyphase input, spatial on lanes
    # w_ref:     (Cout, K*Cin_p)        conv weights with BN scale folded in
    # shift_ref: (Cout, 1)              folded BN shift (+ conv bias)
    # o_ref:     (NB, Cout, T_out*V)    strided output slab, lane-dense
    TV = o_ref.shape[2]
    Cp = x_ref.shape[1] // S            # Cin_p

    # Build the fused LHS: for each batch element, concatenate the K temporally
    # shifted (lane-shifted) phase views along sublanes -> (K*Cin_p, TV); then
    # concatenate the NB batch elements along lanes -> (K*Cin_p, NB*TV).
    cols = []
    for n in range(NB):
        xb = x_ref[n]                                           # (S*Cin_p, L*V)
        taps = []
        for k in range(K):
            r, q = k % S, k // S                                # phase, in-phase shift
            taps.append(xb[r * Cp:(r + 1) * Cp, q * V:q * V + TV])
        cols.append(jnp.concatenate(taps, axis=0))              # (K*Cin_p, TV)
    x2 = cols[0] if NB == 1 else jnp.concatenate(cols, axis=1)  # (K*Cin_p, NB*TV)

    # Single MXU matmul for all taps (and all packed batch elements).
    y = jnp.dot(w_ref[...], x2, preferred_element_type=jnp.float32)  # (Cout, NB*TV)
    y = y + shift_ref[...]                                      # per-channel shift

    for n in range(NB):
        o_ref[n] = y[:, n * TV:(n + 1) * TV].astype(o_ref.dtype)


def unit_tcn_skip_forward(x_nchw, conv_weight, conv_bias,
                          bn_gamma, bn_beta, bn_mean, bn_var,
                          *, stride=1, eps=1e-5):
    """unit_tcn_skip forward: x -> BN(Conv2d_{(K,1), stride=(s,1)}(x)).

    x_nchw:      (N, Cin, T, V) float32 (PyTorch NCHW)
    conv_weight: (Cout, Cin, K, 1)
    conv_bias:   (Cout,)
    bn_*:        (Cout,)
    returns:     (N, Cout, T_out, V)
    """
    N, Cin, T, V = x_nchw.shape
    Cout, Cin_w, K, Kw = conv_weight.shape
    assert Cin_w == Cin and Kw == 1
    S = int(stride)
    pad = (K - 1) // 2
    T_pad = T + 2 * pad
    T_out = (T_pad - K) // S + 1           # PyTorch output length
    L = -(-T_pad // S)                     # per-phase length (ceil)

    # ---- wrapper-side glue (plain JAX, runs once) ----
    # Pad Cin up to a sublane multiple so the in-kernel sublane concat is aligned.
    Cin_p = ((Cin + 7) // 8) * 8
    # Temporal zero pad for the conv + tail pad so T is divisible by the stride.
    x_p = jnp.pad(x_nchw, ((0, 0), (0, Cin_p - Cin),
                           (pad, pad + (S * L - T_pad)), (0, 0)))
    # Polyphase split: phase r holds time indices j*S + r.
    x_ph = x_p.reshape(N, Cin_p, L, S, V)
    x_ph = jnp.transpose(x_ph, (0, 3, 1, 2, 4))                  # (N, S, Cin_p, L, V)
    x_flat = x_ph.reshape(N, S * Cin_p, L * V)

    # Fold BN scale into the conv weights; BN shift + conv bias into a per-channel add.
    inv_std = 1.0 / jnp.sqrt(bn_var + eps)
    scale = bn_gamma * inv_std                                   # (Cout,)
    shift = (bn_beta + (conv_bias - bn_mean) * scale).reshape(Cout, 1)
    w3 = jnp.transpose(conv_weight[..., 0], (0, 2, 1))           # (Cout, K, Cin)
    w3 = jnp.pad(w3, ((0, 0), (0, 0), (0, Cin_p - Cin)))         # (Cout, K, Cin_p)
    w2 = w3.reshape(Cout, K * Cin_p) * scale[:, None]            # column = k*Cin_p + c

    # Pack several batch elements per grid step to amortize per-step overhead.
    NB = min(N, 8)
    N_pad = ((N + NB - 1) // NB) * NB
    if N_pad != N:
        x_flat = jnp.pad(x_flat, ((0, N_pad - N), (0, 0), (0, 0)))

    flops = 2 * N_pad * T_out * V * K * Cin_p * Cout
    bytes_accessed = 4 * (x_flat.size + w2.size + shift.size
                          + N_pad * Cout * T_out * V)

    kernel = functools.partial(_tcn_bn_kernel, K=K, V=V, NB=NB, S=S)
    out_flat = pl.pallas_call(
        kernel,
        out_shape=jax.ShapeDtypeStruct((N_pad, Cout, T_out * V), x_nchw.dtype),
        grid=(N_pad // NB,),
        in_specs=[
            pl.BlockSpec((NB, S * Cin_p, L * V), lambda g: (g, 0, 0)),
            pl.BlockSpec((Cout, K * Cin_p), lambda g: (0, 0)),
            pl.BlockSpec((Cout, 1), lambda g: (0, 0)),
        ],
        out_specs=pl.BlockSpec((NB, Cout, T_out * V), lambda g: (g, 0, 0)),
        compiler_params=pltpu.CompilerParams(dimension_semantics=("parallel",)),
        cost_estimate=pl.CostEstimate(flops=flops, transcendentals=0,
                                      bytes_accessed=bytes_accessed),
    )(x_flat, w2, shift)

    # Already NCHW: a pure reshape, no transpose or subsampling needed.
    return out_flat[:N].reshape(N, Cout, T_out, V)


def _reference(x_nchw, conv_weight, conv_bias, bn_gamma, bn_beta, bn_mean, bn_var,
               *, stride=1, eps=1e-5):
    K = conv_weight.shape[2]
    pad = (K - 1) // 2
    conv = jax.lax.conv_general_dilated(
        x_nchw, conv_weight,
        window_strides=(stride, 1),
        padding=((pad, pad), (0, 0)),
        dimension_numbers=("NCHW", "OIHW", "NCHW"),
    ) + conv_bias.reshape(1, -1, 1, 1)
    inv_std = (1.0 / jnp.sqrt(bn_var + eps)).reshape(1, -1, 1, 1)
    return (conv - bn_mean.reshape(1, -1, 1, 1)) * bn_gamma.reshape(1, -1, 1, 1) * inv_std \
           + bn_beta.reshape(1, -1, 1, 1)


if __name__ == "__main__":
    # Shapes consistent with unit_tcn_skip(in_channels=4, out_channels=8,
    # kernel_size=9) applied to x of shape (N, Cin, T, V).
    N, Cin, Cout, T, V, K = 2, 4, 8, 16, 16, 9

    key = jax.random.PRNGKey(0)
    k_x, k_w, k_b, k_g, k_be, k_m, k_v = jax.random.split(key, 7)

    x = jax.random.normal(k_x, (N, Cin, T, V), dtype=jnp.float32)

    # conv_init: kaiming_normal_(mode='fan_out') -> std = sqrt(2/(Cout*K*1))
    fan_out = Cout * K * 1
    conv_weight = jax.random.normal(k_w, (Cout, Cin, K, 1), jnp.float32) * jnp.sqrt(2.0 / fan_out)
    # Use non-trivial bias / BN parameters to exercise the folding math
    # (forward semantics are identical for any parameter values).
    conv_bias = 0.1 * jax.random.normal(k_b, (Cout,), jnp.float32)
    bn_gamma = 1.0 + 0.1 * jax.random.normal(k_g, (Cout,), jnp.float32)
    bn_beta = 0.1 * jax.random.normal(k_be, (Cout,), jnp.float32)
    bn_mean = 0.1 * jax.random.normal(k_m, (Cout,), jnp.float32)
    bn_var = 1.0 + 0.1 * jax.random.uniform(k_v, (Cout,), jnp.float32)

    pad = (K - 1) // 2
    for stride in (1, 2):
        out = unit_tcn_skip_forward(x, conv_weight, conv_bias,
                                    bn_gamma, bn_beta, bn_mean, bn_var,
                                    stride=stride)
        out = jax.block_until_ready(out)
        ref = _reference(x, conv_weight, conv_bias,
                         bn_gamma, bn_beta, bn_mean, bn_var, stride=stride)
        T_out = (T + 2 * pad - K) // stride + 1
        assert out.shape == (N, Cout, T_out, V), (out.shape, stride)
        err = float(jnp.max(jnp.abs(out - ref)))
        assert jnp.allclose(out, ref, atol=1e-4, rtol=1e-4), (stride, err)

    print("KERNEL_OK")
</pallas_src>

<mosaic_0001>
module attributes {stable_mosaic.version = 11 : i64} {
  func.func @_tcn_bn_kernel(%arg0: i32, %arg1: memref<2x8x384xf32, #tpu.memory_space<vmem>>, %arg2: memref<8x72xf32, #tpu.memory_space<vmem>>, %arg3: memref<8x1xf32, #tpu.memory_space<vmem>>, %arg4: memref<2x8x256xf32, #tpu.memory_space<vmem>>) attributes {dimension_semantics = [#tpu.dimension_semantics<parallel>], iteration_bounds = array<i64: 1>, scalar_prefetch = 0 : i64, scratch_operands = 0 : i64, tpu.core_type = #tpu.core_type<tc>, window_params = [{transform_indices = @transform_0, window_bounds = array<i64: 2, 8, 384>}, {pipeline_mode = #tpu.pipeline_mode<synchronous>, transform_indices = @transform_1, window_bounds = array<i64: 8, 72>}, {pipeline_mode = #tpu.pipeline_mode<synchronous>, transform_indices = @transform_2, window_bounds = array<i64: 8, 1>}, {transform_indices = @transform_3, window_bounds = array<i64: 2, 8, 256>}]} {
    %c0 = arith.constant 0 : index
    %c0_0 = arith.constant 0 : index
    %c0_1 = arith.constant 0 : index
    %0 = vector.load %arg1[%c0, %c0_0, %c0_1] : memref<2x8x384xf32, #tpu.memory_space<vmem>>, vector<1x8x384xf32>
    %1 = vector.shape_cast %0 : vector<1x8x384xf32> to vector<8x384xf32>
    %2 = vector.extract_strided_slice %1 {offsets = [0, 0], sizes = [8, 256], strides = [1, 1]} : vector<8x384xf32> to vector<8x256xf32>
    %3 = vector.extract_strided_slice %1 {offsets = [0, 16], sizes = [8, 256], strides = [1, 1]} : vector<8x384xf32> to vector<8x256xf32>
    %4 = vector.extract_strided_slice %1 {offsets = [0, 32], sizes = [8, 256], strides = [1, 1]} : vector<8x384xf32> to vector<8x256xf32>
    %5 = vector.extract_strided_slice %1 {offsets = [0, 48], sizes = [8, 256], strides = [1, 1]} : vector<8x384xf32> to vector<8x256xf32>
    %6 = vector.extract_strided_slice %1 {offsets = [0, 64], sizes = [8, 256], strides = [1, 1]} : vector<8x384xf32> to vector<8x256xf32>
    %7 = vector.extract_strided_slice %1 {offsets = [0, 80], sizes = [8, 256], strides = [1, 1]} : vector<8x384xf32> to vector<8x256xf32>
    %8 = vector.extract_strided_slice %1 {offsets = [0, 96], sizes = [8, 256], strides = [1, 1]} : vector<8x384xf32> to vector<8x256xf32>
    %9 = vector.extract_strided_slice %1 {offsets = [0, 112], sizes = [8, 256], strides = [1, 1]} : vector<8x384xf32> to vector<8x256xf32>
    %10 = vector.extract_strided_slice %1 {offsets = [0, 128], sizes = [8, 256], strides = [1, 1]} : vector<8x384xf32> to vector<8x256xf32>
    %11 = tpu.concatenate %2, %3, %4, %5, %6, %7, %8, %9, %10 in 0 : vector<8x256xf32>, vector<8x256xf32>, vector<8x256xf32>, vector<8x256xf32>, vector<8x256xf32>, vector<8x256xf32>, vector<8x256xf32>, vector<8x256xf32>, vector<8x256xf32> -> vector<72x256xf32>
    %c1 = arith.constant 1 : index
    %c0_2 = arith.constant 0 : index
    %c0_3 = arith.constant 0 : index
    %12 = vector.load %arg1[%c1, %c0_2, %c0_3] : memref<2x8x384xf32, #tpu.memory_space<vmem>>, vector<1x8x384xf32>
    %13 = vector.shape_cast %12 : vector<1x8x384xf32> to vector<8x384xf32>
    %14 = vector.extract_strided_slice %13 {offsets = [0, 0], sizes = [8, 256], strides = [1, 1]} : vector<8x384xf32> to vector<8x256xf32>
    %15 = vector.extract_strided_slice %13 {offsets = [0, 16], sizes = [8, 256], strides = [1, 1]} : vector<8x384xf32> to vector<8x256xf32>
    %16 = vector.extract_strided_slice %13 {offsets = [0, 32], sizes = [8, 256], strides = [1, 1]} : vector<8x384xf32> to vector<8x256xf32>
    %17 = vector.extract_strided_slice %13 {offsets = [0, 48], sizes = [8, 256], strides = [1, 1]} : vector<8x384xf32> to vector<8x256xf32>
    %18 = vector.extract_strided_slice %13 {offsets = [0, 64], sizes = [8, 256], strides = [1, 1]} : vector<8x384xf32> to vector<8x256xf32>
    %19 = vector.extract_strided_slice %13 {offsets = [0, 80], sizes = [8, 256], strides = [1, 1]} : vector<8x384xf32> to vector<8x256xf32>
    %20 = vector.extract_strided_slice %13 {offsets = [0, 96], sizes = [8, 256], strides = [1, 1]} : vector<8x384xf32> to vector<8x256xf32>
    %21 = vector.extract_strided_slice %13 {offsets = [0, 112], sizes = [8, 256], strides = [1, 1]} : vector<8x384xf32> to vector<8x256xf32>
    %22 = vector.extract_strided_slice %13 {offsets = [0, 128], sizes = [8, 256], strides = [1, 1]} : vector<8x384xf32> to vector<8x256xf32>
    %23 = tpu.concatenate %14, %15, %16, %17, %18, %19, %20, %21, %22 in 0 : vector<8x256xf32>, vector<8x256xf32>, vector<8x256xf32>, vector<8x256xf32>, vector<8x256xf32>, vector<8x256xf32>, vector<8x256xf32>, vector<8x256xf32>, vector<8x256xf32> -> vector<72x256xf32>
    %24 = tpu.concatenate %11, %23 in 1 : vector<72x256xf32>, vector<72x256xf32> -> vector<72x512xf32>
    %c0_4 = arith.constant 0 : index
    %c0_5 = arith.constant 0 : index
    %25 = vector.load %arg2[%c0_4, %c0_5] : memref<8x72xf32, #tpu.memory_space<vmem>>, vector<8x72xf32>
    %cst = arith.constant dense<0.000000e+00> : vector<8x512xf32>
    %26 = tpu.matmul %25, %24, %cst {dimension_numbers = #tpu.dot_dimension_numbers<[1], [0], [0], [1], [0, 0, 1, 1], [], []>} : vector<8x72xf32>, vector<72x512xf32>, vector<8x512xf32> -> vector<8x512xf32>
    %c0_6 = arith.constant 0 : index
    %c0_7 = arith.constant 0 : index
    %27 = vector.load %arg3[%c0_6, %c0_7] : memref<8x1xf32, #tpu.memory_space<vmem>>, vector<8x1xf32>
    %28 = vector.broadcast %27 : vector<8x1xf32> to vector<8x512xf32>
    %29 = arith.addf %26, %28 : vector<8x512xf32>
    %30 = vector.extract_strided_slice %29 {offsets = [0, 0], sizes = [8, 256], strides = [1, 1]} : vector<8x512xf32> to vector<8x256xf32>
    %c0_8 = arith.constant 0 : index
    %c0_9 = arith.constant 0 : index
    %c0_10 = arith.constant 0 : index
    %31 = vector.load %arg4[%c0_8, %c0_9, %c0_10] : memref<2x8x256xf32, #tpu.memory_space<vmem>>, vector<1x8x256xf32>
    %32 = vector.shape_cast %31 : vector<1x8x256xf32> to vector<8x256xf32>
    %33 = vector.shape_cast %30 : vector<8x256xf32> to vector<1x8x256xf32>
    tpu.vector_store %arg4[%c0_8, %c0_9, %c0_10], %33 {strides = array<i32>} : memref<2x8x256xf32, #tpu.memory_space<vmem>>, vector<1x8x256xf32>,
    %34 = vector.extract_strided_slice %29 {offsets = [0, 256], sizes = [8, 256], strides = [1, 1]} : vector<8x512xf32> to vector<8x256xf32>
    %c1_11 = arith.constant 1 : index
    %c0_12 = arith.constant 0 : index
    %c0_13 = arith.constant 0 : index
    %35 = vector.load %arg4[%c1_11, %c0_12, %c0_13] : memref<2x8x256xf32, #tpu.memory_space<vmem>>, vector<1x8x256xf32>
    %36 = vector.shape_cast %35 : vector<1x8x256xf32> to vector<8x256xf32>
    %37 = vector.shape_cast %34 : vector<8x256xf32> to vector<1x8x256xf32>
    tpu.vector_store %arg4[%c1_11, %c0_12, %c0_13], %37 {strides = array<i32>} : memref<2x8x256xf32, #tpu.memory_space<vmem>>, vector<1x8x256xf32>,
    return
  }
  func.func @transform_0(%arg0: i32) -> (i32, i32, i32) {
    %c0_i32 = arith.constant 0 : i32
    %c0_i32_0 = arith.constant 0 : i32
    %c0_i32_1 = arith.constant 0 : i32
    return %arg0, %c0_i32, %c0_i32_0 : i32, i32, i32
  }
  func.func @transform_1(%arg0: i32) -> (i32, i32) {
    %c0_i32 = arith.constant 0 : i32
    %c0_i32_0 = arith.constant 0 : i32
    %c0_i32_1 = arith.constant 0 : i32
    return %c0_i32, %c0_i32_0 : i32, i32
  }
  func.func @transform_2(%arg0: i32) -> (i32, i32) {
    %c0_i32 = arith.constant 0 : i32
    %c0_i32_0 = arith.constant 0 : i32
    %c0_i32_1 = arith.constant 0 : i32
    return %c0_i32, %c0_i32_0 : i32, i32
  }
  func.func @transform_3(%arg0: i32) -> (i32, i32, i32) {
    %c0_i32 = arith.constant 0 : i32
    %c0_i32_0 = arith.constant 0 : i32
    %c0_i32_1 = arith.constant 0 : i32
    return %arg0, %c0_i32, %c0_i32_0 : i32, i32, i32
  }
}

</mosaic_0001>

<bundles_post_ra>
// kernel: tpu_custom_call.1
= control target key start
LH: loop header
LB: loop body
LE: loop exit
PB: predicated region body
PF: predicated region fallthrough
CT: control target
= control target key end

     0   :  { %8 = vsyncpa [#allocation3], 0  ;;  %s685_s0 = inlined_call_operand.hbm [shape: f32[2,8,384], index: 0, kind: input, shape index: {}]   ;;  %s686_s1 = inlined_call_operand.vmem [shape: f32[8,72], index: 1, kind: input, shape index: {}]   ;;  %s687_s2 = inlined_call_operand.vmem [shape: f32[8,1], index: 2, kind: input, shape index: {}]   ;;  %s688_s3 = inlined_call_operand.hbm [shape: f32[2,8,256], index: 3, kind: output, shape index: {}]  }
   0x1   :  { %9 = vsyncpa [#allocation4], 0  ;;  %s567_s12 = smov [#allocation2]   ;;  %s519_s16 = scalar_lea.hbm %s685_s0, 768 }
   0x2   :  { %s15_s13 = sshll.u32 %s567_s12, 4  ;;  %p520_p0 = scmp.ne.s32.totalorder %s685_s0, %s519_s16  ;;  %s16_s13 = int_to_ptr.vmem [resolvable:$true] %s15_s13 }
   0x3   :  { %p523_p1 = scmp.lt.u32.totalorder %s519_s16, %s685_s0 }
   0x5   :  { %p525_p2 = pnand %p523_p1, %p520_p0 }
   0x7   :  { %528 = shalt.err (!%p525_p2)
}
   0x8   :  { %s529_s21 = scalar_lea.vmem %s16_s13, 768  ;;  %p534_p4 = scmp.lt.s32.totalorder %s16_s13, %s16_s13 }
   0x9   :  { %p530_p3 = scmp.ne.s32.totalorder %s16_s13, %s529_s21  ;;  %p535_p5 = scmp.lt.s32.totalorder %s529_s21, %s529_s21 }
   0xb   :  { %p536_p6 = por %p535_p5, %p534_p4 }
   0xd   :  { %p537_p7 = pnand %p536_p6, %p530_p3 }
   0xf   :  { %540 = shalt.err (!%p537_p7)
}
  0x10   :  { %s568_s22 = smov 384   ;;  %s569_s23 = smov 24  }
  0x11   :  { %21 = dma.hbm_to_vmem [thread:$0]  %s685_s0, 768, %s16_s13, [#allocation3], %s568_s22, %s568_s22, %s569_s23  }
  0x12   :  { %563 = dma.done.wait [#allocation3], 768  }
  0x13   :  { %564 = vsyncadd [#allocation3], 4294966528  ;;  %v613_v0 = vld [vmem:[#allocation2 + $0x8] sm:$0xff]  ;;  %v615_v1 = vld [vmem:[#allocation2 + $0x10] sm:$0xff]  ;;  %s570_s26 = smov 112   ;;  %s571_s0 = smov 96  }
  0x14   :  { %v29_v2 = vld [vmem:[#allocation2] sm:$0xff]  ;;  %v412_v3 = vpack.i.bf16 %v615_v1, %v613_v0  ;;  %v619_v4 = vld [vmem:[#allocation2 + $0x18] sm:$0xff]  ;;  %v623_v6 = vld [vmem:[#allocation2 + $0x28] sm:$0xff]  ;;  %s572_s27 = smov 80   ;;  %s573_s28 = smov 64   ;;  %v577_v9 = vmov 0.0  }
  0x15   :  { %v621_v5 = vld [vmem:[#allocation2 + $0x20] sm:$0xff]  ;;  %v422_v7 = vpack.i.bf16 %v619_v4, %v29_v2  ;;  %s574_s29 = smov 48   ;;  %s575_s30 = smov 32   ;;  %264 = vmatprep.mubr.f32.mxu0 %v577_v9  ;;  %335 = vmatprep.mubr.f32.mxu1 %v577_v9  ;;  %v578_v10 = vmov 0   ;;  %vm41_vm0 = vcmask 916480   ;;  %vm52_vm1 = vcmask 785408  }
  0x16   :  { %413 = vrot.lane.b32.xlu0 %v412_v3, %s570_s26  ;;  %v417_v8 = vpack.i.bf16 %v623_v6, %v621_v5  ;;  %s576_s4 = smov 16   ;;  %517 = vset.pattern.permute.xlu1 %v578_v10  ;;  %v190_v11 = vld [vmem:[%s687_s2] sm:$0xff]  ;;  %vm63_vm2 = vcmask 654336   ;;  %vm74_vm3 = vcmask 523264   ;;  %vm85_vm4 = vcmask 392192   ;;  %s579_s8 = smov [#allocation5]  }
  0x17   :  { %423 = vrot.lane.b32.xlu1 %v422_v7, %s570_s26  ;;  %518 = vset.pattern.permute.xlu0 %v578_v10  ;;  %vm96_vm5 = vcmask 261120   ;;  %vm107_vm6 = vcmask 130048   ;;  %vm196_vm7 = vcmask 588800   ;;  %s352_s9 = sshll.u32 %s579_s8, 4  ;;  %s353_s9 = int_to_ptr.vmem [resolvable:$true] %s352_s9 }
  0x18   :  { %p546_p9 = scmp.lt.s32.totalorder %s353_s9, %s353_s9 }
  0x1a   :  { %418 = vrot.lane.b32.xlu0 %v417_v8, %s570_s26 }
  0x1b   :  { %428 = vrot.lane.b32.xlu1 %v412_v3, %s571_s0 }
  0x1e   :  { %433 = vrot.lane.b32.xlu0 %v412_v3, %s572_s27 }
  0x1f   :  { %438 = vrot.lane.b32.xlu1 %v417_v8, %s571_s0 }
  0x22   :  { %443 = vrot.lane.b32.xlu0 %v417_v8, %s572_s27 }
  0x23   :  { %448 = vrot.lane.b32.xlu1 %v422_v7, %s571_s0 }
  0x26   :  { %453 = vrot.lane.b32.xlu0 %v422_v7, %s572_s27 }
  0x27   :  { %458 = vrot.lane.b32.xlu1 %v412_v3, %s573_s28 }
  0x2a   :  { %463 = vrot.lane.b32.xlu0 %v412_v3, %s574_s29 }
  0x2b   :  { %468 = vrot.lane.b32.xlu1 %v417_v8, %s573_s28 }
  0x2e   :  { %473 = vrot.lane.b32.xlu0 %v417_v8, %s574_s29 }
  0x2f   :  { %478 = vrot.lane.b32.xlu1 %v422_v7, %s573_s28 }
  0x32   :  { %483 = vrot.lane.b32.xlu0 %v422_v7, %s574_s29 }
  0x33   :  { %488 = vrot.lane.b32.xlu1 %v412_v3, %s575_s30 }
  0x36   :  { %493 = vrot.lane.b32.xlu0 %v412_v3, %s576_s4 }
  0x37   :  { %498 = vrot.lane.b32.xlu1 %v417_v8, %s575_s30 }
  0x3a   :  { %503 = vrot.lane.b32.xlu0 %v417_v8, %s576_s4 }
  0x3b   :  { %508 = vrot.lane.b32.xlu1 %v422_v7, %s575_s30 }
  0x3e   :  { %513 = vrot.lane.b32.xlu0 %v422_v7, %s576_s4 }
  0x3f   :  { %193 = vperm.xlu1 %517, %v190_v11  }
  0x88   :  { %v414_v12 = vpop.permute.xlu0 %413 }
  0x89   :  { %v416_v13 = vunpack.i.h.bf16 %v414_v12  ;;  %v415_v14 = vunpack.i.l.bf16 %v414_v12  ;;  %v424_v15 = vpop.permute.xlu1 %423 }
  0x8a   :  { %v425_v16 = vunpack.i.l.bf16 %v424_v15  ;;  %v426_v17 = vunpack.i.h.bf16 %v424_v15 }
  0x8b   :  { %v43_v18 = vsel %vm41_vm0, %v415_v14, %v416_v13 }
  0x8c   :  { %v419_v19 = vpop.permute.xlu0 %418  ;;  %v366_v20 = vpack.c.bf16 %v43_v18, %v613_v0  ;;  %v42_v21 = vsel %vm41_vm0, %v425_v16, %v415_v14 }
  0x8d   :  { %v421_v22 = vunpack.i.h.bf16 %v419_v19  ;;  %v420_v23 = vunpack.i.l.bf16 %v419_v19  ;;  %v429_v24 = vpop.permute.xlu1 %428  ;;  %v368_v25 = vpack.c.bf16 %v42_v21, %v29_v2 }
  0x8e   :  { %v431_v26 = vunpack.i.h.bf16 %v429_v24  ;;  %v430_v27 = vunpack.i.l.bf16 %v429_v24  ;;  %367 = vmatprep.subr.bf16.mxu0 %v366_v20 }
  0x8f   :  { %369 = vmatpush1.bf16.msra.mxu0 %v368_v25  ;;  %v126_v28 = vsel %vm41_vm0, %v420_v23, %v421_v22  ;;  %v125_v29 = vsel %vm41_vm0, %v426_v17, %v420_v23 }
  0x90   :  { %v434_v30 = vpop.permute.xlu0 %433  ;;  %v382_v31 = vpack.c.bf16 %v126_v28, %v621_v5  ;;  %v384_v32 = vpack.c.bf16 %v125_v29, %v619_v4  ;;  %v54_v36 = vsel %vm52_vm1, %v430_v27, %v431_v26 }
  0x91   :  { %v436_v33 = vunpack.i.h.bf16 %v434_v30  ;;  %v435_v34 = vunpack.i.l.bf16 %v434_v30  ;;  %v439_v35 = vpop.permute.xlu1 %438 }
  0x92   :  { %v441_v37 = vunpack.i.h.bf16 %v439_v35  ;;  %v440_v38 = vunpack.i.l.bf16 %v439_v35  ;;  %383 = vmatprep.subr.bf16.mxu1 %v382_v31 }
  0x93   :  { %385 = vmatpush1.bf16.msra.mxu1 %v384_v32  ;;  %v65_v39 = vsel %vm63_vm2, %v435_v34, %v436_v33 }
  0x94   :  { %v444_v40 = vpop.permute.xlu0 %443  ;;  %v370_v41 = vpack.c.bf16 %v65_v39, %v54_v36  ;;  %v136_v45 = vsel %vm52_vm1, %v440_v38, %v441_v37 }
  0x95   :  { %v446_v42 = vunpack.i.h.bf16 %v444_v40  ;;  %v445_v43 = vunpack.i.l.bf16 %v444_v40  ;;  %v449_v44 = vpop.permute.xlu1 %448 }
  0x96   :  { %371 = vmatprep.subr.bf16.mxu0 %v370_v41  ;;  %v451_v46 = vunpack.i.h.bf16 %v449_v44  ;;  %v450_v47 = vunpack.i.l.bf16 %v449_v44 }
  0x97   :  { %v146_v48 = vsel %vm63_vm2, %v445_v43, %v446_v42 }
  0x98   :  { %v454_v49 = vpop.permute.xlu0 %453  ;;  %v386_v50 = vpack.c.bf16 %v146_v48, %v136_v45  ;;  %v53_v56 = vsel %vm52_vm1, %v450_v47, %v430_v27  ;;  %v135_v58 = vsel %vm52_vm1, %v451_v46, %v440_v38 }
  0x99   :  { %v456_v51 = vunpack.i.h.bf16 %v454_v49  ;;  %v455_v52 = vunpack.i.l.bf16 %v454_v49  ;;  %v459_v53 = vpop.permute.xlu1 %458 }
  0x9a   :  { %v461_v54 = vunpack.i.h.bf16 %v459_v53  ;;  %v460_v55 = vunpack.i.l.bf16 %v459_v53  ;;  %387 = vmatprep.subr.bf16.mxu1 %v386_v50 }
  0x9b   :  { %v64_v57 = vsel %vm63_vm2, %v455_v52, %v435_v34  ;;  %v145_v59 = vsel %vm63_vm2, %v456_v51, %v445_v43 }
  0x9c   :  { %v464_v60 = vpop.permute.xlu0 %463  ;;  %v372_v61 = vpack.c.bf16 %v64_v57, %v53_v56  ;;  %v388_v62 = vpack.c.bf16 %v145_v59, %v135_v58  ;;  %v76_v4 = vsel %vm74_vm3, %v460_v55, %v461_v54  ;;  %v189_v59 = vld [vmem:[%s686_s1] sm:$0xff]  ;;  %s541_s1 = scalar_lea.vmem %s353_s9, 512 }
  0x9d   :  { %v466_v63 = vunpack.i.h.bf16 %v464_v60  ;;  %v465_v2 = vunpack.i.l.bf16 %v464_v60  ;;  %v469_v3 = vpop.permute.xlu1 %468  ;;  %p542_p8 = scmp.ne.s32.totalorder %s353_s9, %s541_s1  ;;  %p547_p10 = scmp.lt.s32.totalorder %s541_s1, %s541_s1 }
  0x9e   :  { %v471_v7 = vunpack.i.h.bf16 %v469_v3  ;;  %v470_v8 = vunpack.i.l.bf16 %v469_v3  ;;  %373 = vmatpush1.bf16.msra.mxu0 %v372_v61  ;;  %389 = vmatpush1.bf16.msra.mxu1 %v388_v62 }
  0x9f   :  { %v87_v9 = vsel %vm85_vm4, %v465_v2, %v466_v63  ;;  %p548_p11 = por %p547_p10, %p546_p9 }
  0xa0   :  { %v474_v10 = vpop.permute.xlu0 %473  ;;  %v374_v11 = vpack.c.bf16 %v87_v9, %v76_v4  ;;  %v156_v15 = vsel %vm74_vm3, %v470_v8, %v471_v7 }
  0xa1   :  { %v476_v12 = vunpack.i.h.bf16 %v474_v10  ;;  %v475_v13 = vunpack.i.l.bf16 %v474_v10  ;;  %v479_v14 = vpop.permute.xlu1 %478  ;;  %p549_p12 = pnand %p548_p11, %p542_p8 }
  0xa2   :  { %375 = vmatprep.subr.bf16.mxu0 %v374_v11  ;;  %v481_v16 = vunpack.i.h.bf16 %v479_v14  ;;  %v480_v17 = vunpack.i.l.bf16 %v479_v14 }
  0xa3   :  { %v166_v18 = vsel %vm85_vm4, %v475_v13, %v476_v12 }
  0xa4   :  { %v484_v19 = vpop.permute.xlu0 %483  ;;  %v390_v20 = vpack.c.bf16 %v166_v18, %v156_v15  ;;  %v75_v26 = vsel %vm74_vm3, %v480_v17, %v460_v55  ;;  %v155_v28 = vsel %vm74_vm3, %v481_v16, %v470_v8 }
  0xa5   :  { %v486_v21 = vunpack.i.h.bf16 %v484_v19  ;;  %v485_v22 = vunpack.i.l.bf16 %v484_v19  ;;  %v489_v23 = vpop.permute.xlu1 %488 }
  0xa6   :  { %v491_v24 = vunpack.i.h.bf16 %v489_v23  ;;  %v490_v25 = vunpack.i.l.bf16 %v489_v23  ;;  %391 = vmatprep.subr.bf16.mxu1 %v390_v20 }
  0xa7   :  { %v86_v27 = vsel %vm85_vm4, %v485_v22, %v465_v2  ;;  %v165_v29 = vsel %vm85_vm4, %v486_v21, %v475_v13 }
  0xa8   :  { %v494_v30 = vpop.permute.xlu0 %493  ;;  %v376_v31 = vpack.c.bf16 %v86_v27, %v75_v26  ;;  %v392_v32 = vpack.c.bf16 %v165_v29, %v155_v28  ;;  %v98_v36 = vsel %vm96_vm5, %v490_v25, %v491_v24 }
  0xa9   :  { %v496_v33 = vunpack.i.h.bf16 %v494_v30  ;;  %v495_v34 = vunpack.i.l.bf16 %v494_v30  ;;  %v499_v35 = vpop.permute.xlu1 %498 }
  0xaa   :  { %v501_v37 = vunpack.i.h.bf16 %v499_v35  ;;  %v500_v38 = vunpack.i.l.bf16 %v499_v35  ;;  %377 = vmatpush1.bf16.msra.mxu0 %v376_v31  ;;  %393 = vmatpush1.bf16.msra.mxu1 %v392_v32 }
  0xab   :  { %v109_v39 = vsel %vm107_vm6, %v495_v34, %v496_v33 }
  0xac   :  { %v504_v40 = vpop.permute.xlu0 %503  ;;  %v378_v41 = vpack.c.bf16 %v109_v39, %v98_v36  ;;  %v176_v45 = vsel %vm96_vm5, %v500_v38, %v501_v37 }
  0xad   :  { %v506_v42 = vunpack.i.h.bf16 %v504_v40  ;;  %v505_v43 = vunpack.i.l.bf16 %v504_v40  ;;  %v509_v44 = vpop.permute.xlu1 %508 }
  0xae   :  { %379 = vmatprep.subr.bf16.mxu0 %v378_v41  ;;  %v511_v46 = vunpack.i.h.bf16 %v509_v44  ;;  %v510_v47 = vunpack.i.l.bf16 %v509_v44 }
  0xaf   :  { %v186_v48 = vsel %vm107_vm6, %v505_v43, %v506_v42 }
  0xb0   :  { %v514_v49 = vpop.permute.xlu0 %513  ;;  %v394_v50 = vpack.c.bf16 %v186_v48, %v176_v45  ;;  %v97_v53 = vsel %vm96_vm5, %v510_v47, %v490_v25  ;;  %v175_v55 = vsel %vm96_vm5, %v511_v46, %v500_v38 }
  0xb1   :  { %v516_v51 = vunpack.i.h.bf16 %v514_v49  ;;  %v515_v52 = vunpack.i.l.bf16 %v514_v49 }
  0xb2   :  { %395 = vmatprep.subr.bf16.mxu1 %v394_v50 }
  0xb3   :  { %v108_v54 = vsel %vm107_vm6, %v515_v52, %v495_v34  ;;  %v185_v56 = vsel %vm107_vm6, %v516_v51, %v505_v43 }
  0xb4   :  { %v380_v57 = vpack.c.bf16 %v108_v54, %v97_v53  ;;  %v396_v58 = vpack.c.bf16 %v185_v56, %v175_v55 }
  0xb6   :  { %381 = vmatpush1.bf16.msra.mxu0 %v380_v57  ;;  %397 = vmatpush1.bf16.msra.mxu1 %v396_v58 }
  0xb7   :  { %216 = vmatprep.subr.mxu0 %v615_v1  ;;  %287 = vmatprep.subr.mxu1 %v623_v6 }
  0xba   :  { %217 = vmatpush1.msra.mxu0 %v613_v0  ;;  %288 = vmatpush1.msra.mxu1 %v621_v5 }
  0xbb   :  { %364 = vmatmul.mubr.msk.f32.vlgmr.msra.gmra.mrb[0].mxu0 %vm196_vm7, %v189_v59  ;;  %365 = vmatmul.mubr.msk.f32.vlgmr.msra.gmra.mrb[0].mxu1 %vm196_vm7, %v189_v59 }
  0xbe   :  { %v194_v60 = vpop.permute.xlu1 %193 }
 0x18e   :  { %v266_v61 = vpop.f32.mrb[0].mxu0  ;;  %v337_v62 = vpop.f32.mrb[0].mxu1 }
 0x18f   :  { %v267_v63 = vadd.f32 %v266_v61, %v194_v60  ;;  %v338_v1 = vadd.f32 %v337_v62, %v194_v60  ;;  %v268_v2 = vpop.f32.mrb[1].mxu0  ;;  %v339_v6 = vpop.f32.mrb[1].mxu1 }
 0x190   :  { %v269_v3 = vadd.f32 %v268_v2, %v194_v60  ;;  %v340_v4 = vadd.f32 %v339_v6, %v194_v60 }
 0x191   :  { %342 = vst [vmem:[#allocation5] sm:$0xff] %v267_v63  ;;  %345 = vst [vmem:[#allocation5 + $0x10] sm:$0xff] %v338_v1 }
 0x192   :  { %343 = vst [vmem:[#allocation5 + $0x8] sm:$0xff] %v269_v3  ;;  %346 = vst [vmem:[#allocation5 + $0x18] sm:$0xff] %v340_v4 }
 0x193   :  { %552 = shalt.err (!%p549_p12)
}
 0x194   :  { %s553_s12 = scalar_lea.hbm %s688_s3, 512 }
 0x195   :  { %p554_p13 = scmp.ne.s32.totalorder %s688_s3, %s553_s12  ;;  %p557_p0 = scmp.lt.u32.totalorder %s553_s12, %s688_s3 }
 0x197   :  { %p559_p1 = pnand %p557_p0, %p554_p13 }
 0x199   :  { %562 = shalt.err (!%p559_p1)
}
 0x19a   :  { %s580_s17 = smov 256  }
 0x19b   :  { %358 = dma.vmem_to_hbm [thread:$0]  %s353_s9, 512, %s688_s3, [#allocation4], %s580_s17, %s580_s17, %s576_s4  }
 0x19c   :  { %565 = dma.done.wait [#allocation4], 512  }
 0x19d   :  { %566 = vsyncadd [#allocation4], 4294966784 }
 0x19e   :  { %362 = vsyncpa [#allocation3], 1 }
 0x19f   :  { %363 = vsyncpa [#allocation4], 1 }

</bundles_post_ra>
